<compile_context>
chip_gen: v6e
topology: v6e:2x2x1
jax: 0.10.0
libtpu: 0.0.40
codegen_flags: <defaults>
</compile_context>

<pallas_src>
import math

import jax
import jax.numpy as jnp
from jax.experimental import pallas as pl
from jax.experimental.pallas import tpu as pltpu

IMAGE_DIM = 1 * 28 * 28          # 784
OUTPUT_SHAPE = (1, 28, 28)
LAYER_DIMS = [IMAGE_DIM, 128, 64, 16, 64, 128, IMAGE_DIM]

# Max batch-tile rows per grid step.  512 reaches ~85% of the measured HBM
# roofline curve, keeps double-buffered f32 in/out tiles (~6.4 MB) + weights
# well under v5e's 16 MiB default scoped VMEM, and leaves >=2 grid steps on
# v7x (2 TensorCores) for batches >= 1024.
TM_MAX = 512


def _ae_kernel(x_ref,
               w1_ref, b1_ref, w2_ref, b2_ref, w34_ref, b34_ref,
               w5_ref, b5_ref, w6_ref, b6_ref,
               out_ref):
    """Whole (fused) autoencoder MLP on one (TM, 784) batch tile."""
    x = x_ref[...].astype(jnp.bfloat16)                       # f32 -> bf16 (VPU, free)

    h = jnp.dot(x, w1_ref[...], preferred_element_type=jnp.float32) + b1_ref[...]
    h = jnp.maximum(h, 0.0)

    h = jnp.dot(h.astype(jnp.bfloat16), w2_ref[...],
                preferred_element_type=jnp.float32) + b2_ref[...]
    h = jnp.maximum(h, 0.0)

    # Fused latent bottleneck: Linear(64,16) -> Linear(16,64) has no
    # nonlinearity in between, so it collapses to a single 64x64 matmul.
    # The module's ReLU *after* Linear(16,64) is applied here.
    h = jnp.dot(h.astype(jnp.bfloat16), w34_ref[...],
                preferred_element_type=jnp.float32) + b34_ref[...]
    h = jnp.maximum(h, 0.0)

    h = jnp.dot(h.astype(jnp.bfloat16), w5_ref[...],
                preferred_element_type=jnp.float32) + b5_ref[...]
    h = jnp.maximum(h, 0.0)

    h = jnp.dot(h.astype(jnp.bfloat16), w6_ref[...],
                preferred_element_type=jnp.float32) + b6_ref[...]
    out_ref[...] = jnp.tanh(h)                                 # f32 tanh, f32 store


def init_params(key):
    """PyTorch nn.Linear-style init: U(-1/sqrt(fan_in), 1/sqrt(fan_in)).
    Weights stored transposed: (in_features, out_features)."""
    params = []
    for i in range(len(LAYER_DIMS) - 1):
        fan_in, fan_out = LAYER_DIMS[i], LAYER_DIMS[i + 1]
        key, kw, kb = jax.random.split(key, 3)
        bound = 1.0 / math.sqrt(fan_in)
        w = jax.random.uniform(kw, (fan_in, fan_out), jnp.float32, -bound, bound)
        b = jax.random.uniform(kb, (1, fan_out), jnp.float32, -bound, bound)
        params.append((w, b))
    return params


def prepare_params(params):
    """One-time param prep: fuse W3@W4 (no activation between them) in f32,
    cast weights to bf16 for the MXU; biases stay f32."""
    (w1, b1), (w2, b2), (w3, b3), (w4, b4), (w5, b5), (w6, b6) = params

    w34 = w3 @ w4                      # (64, 64)
    b34 = b3 @ w4 + b4                 # (1, 64)

    bf = lambda a: a.astype(jnp.bfloat16)
    return (bf(w1), b1, bf(w2), b2, bf(w34), b34, bf(w5), b5, bf(w6), b6)


def _pick_tiling(B):
    """Pick (TM, Bp) so padding is minimal, TM <= ~TM_MAX, TM % 16 == 0."""
    n_steps = max(1, -(-B // TM_MAX))          # cdiv
    tm = -(-B // n_steps)                      # rows per step
    tm = max(16, ((tm + 15) // 16) * 16)       # multiple of 16 (bf16 sublane packing)
    return tm, n_steps * tm


@jax.jit
def autoencoder_lin_forward(x_nchw, prepared):
    """x_nchw: (B, 1, 28, 28) float32 -> (B, 1, 28, 28) float32."""
    w1, b1, w2, b2, w34, b34, w5, b5, w6, b6 = prepared

    B = x_nchw.shape[0]
    x = x_nchw.reshape(B, IMAGE_DIM)           # nn.Flatten; stays f32, no XLA cast/pad pass

    TM, Bp = _pick_tiling(B)
    if Bp != B:
        x = jnp.pad(x, ((0, Bp - B), (0, 0)))

    act_spec = pl.BlockSpec((TM, IMAGE_DIM), lambda i: (i, 0))
    # Constant block index across the batch grid -> fetched once, VMEM-resident.
    const_spec = lambda a: pl.BlockSpec(a.shape, lambda i: (0, 0))
    weights = (w1, b1, w2, b2, w34, b34, w5, b5, w6, b6)

    out = pl.pallas_call(
        _ae_kernel,
        out_shape=jax.ShapeDtypeStruct((Bp, IMAGE_DIM), jnp.float32),
        grid=(Bp // TM,),
        in_specs=[act_spec] + [const_spec(a) for a in weights],
        out_specs=act_spec,
        compiler_params=pltpu.CompilerParams(
            dimension_semantics=("parallel",),
        ),
    )(x, *weights)

    if Bp != B:
        out = out[:B]
    return out.reshape(B, *OUTPUT_SHAPE)       # nn.Unflatten (free: shape-only)


def _reference_forward_prepared(x_nchw, prepared):
    """Pure-JAX mirror of the kernel math (same bf16 weights, f32 accum)."""
    w1, b1, w2, b2, w34, b34, w5, b5, w6, b6 = prepared
    B = x_nchw.shape[0]
    h = x_nchw.reshape(B, IMAGE_DIM)
    layers = [(w1, b1), (w2, b2), (w34, b34), (w5, b5), (w6, b6)]
    for i, (w, b) in enumerate(layers):
        h = jnp.dot(h.astype(jnp.bfloat16), w,
                    preferred_element_type=jnp.float32) + b
        if i < 4:
            h = jnp.maximum(h, 0.0)
    h = jnp.tanh(h)
    return h.reshape(B, *OUTPUT_SHAPE)


def _reference_forward_f32(x_nchw, params):
    """Original (unfused, f32) module semantics."""
    B = x_nchw.shape[0]
    h = x_nchw.reshape(B, IMAGE_DIM)
    for i, (w, b) in enumerate(params):
        h = h @ w + b
        if i in (0, 1, 3, 4):                  # ReLU after L1, L2, L4, L5
            h = jnp.maximum(h, 0.0)
    h = jnp.tanh(h)
    return h.reshape(B, *OUTPUT_SHAPE)


if __name__ == "__main__":
    key = jax.random.PRNGKey(0)
    key, kx = jax.random.split(key)

    B = 2
    x = jax.random.normal(kx, (B, 1, 28, 28), jnp.float32)    # NCHW, like PyTorch
    params = init_params(key)
    prepared = prepare_params(params)

    out = autoencoder_lin_forward(x, prepared)
    out = jax.block_until_ready(out)

    assert out.shape == (B, 1, 28, 28), out.shape

    # Tight check vs an exact pure-JAX mirror of the kernel math (bf16 weights).
    ref_tight = _reference_forward_prepared(x, prepared)
    assert jnp.allclose(out, ref_tight, atol=5e-3, rtol=5e-3), "mismatch vs mirrored reference"

    # Looser semantic check vs the original f32, unfused module.
    ref_f32 = _reference_forward_f32(x, params)
    assert jnp.allclose(out, ref_f32, atol=5e-2), "mismatch vs f32 module reference"

    print("KERNEL_OK")
</pallas_src>

<mosaic_0001>
module attributes {stable_mosaic.version = 11 : i64} {
  func.func @_ae_kernel(%arg0: i32, %arg1: memref<16x784xf32, #tpu.memory_space<vmem>>, %arg2: memref<784x128xbf16, #tpu.memory_space<vmem>>, %arg3: memref<1x128xf32, #tpu.memory_space<vmem>>, %arg4: memref<128x64xbf16, #tpu.memory_space<vmem>>, %arg5: memref<1x64xf32, #tpu.memory_space<vmem>>, %arg6: memref<64x64xbf16, #tpu.memory_space<vmem>>, %arg7: memref<1x64xf32, #tpu.memory_space<vmem>>, %arg8: memref<64x128xbf16, #tpu.memory_space<vmem>>, %arg9: memref<1x128xf32, #tpu.memory_space<vmem>>, %arg10: memref<128x784xbf16, #tpu.memory_space<vmem>>, %arg11: memref<1x784xf32, #tpu.memory_space<vmem>>, %arg12: memref<16x784xf32, #tpu.memory_space<vmem>>) attributes {dimension_semantics = [#tpu.dimension_semantics<parallel>], iteration_bounds = array<i64: 1>, scalar_prefetch = 0 : i64, scratch_operands = 0 : i64, tpu.core_type = #tpu.core_type<tc>, window_params = [{transform_indices = @transform_0, window_bounds = array<i64: 16, 784>}, {pipeline_mode = #tpu.pipeline_mode<synchronous>, transform_indices = @transform_1, window_bounds = array<i64: 784, 128>}, {pipeline_mode = #tpu.pipeline_mode<synchronous>, transform_indices = @transform_2, window_bounds = array<i64: 1, 128>}, {pipeline_mode = #tpu.pipeline_mode<synchronous>, transform_indices = @transform_3, window_bounds = array<i64: 128, 64>}, {pipeline_mode = #tpu.pipeline_mode<synchronous>, transform_indices = @transform_4, window_bounds = array<i64: 1, 64>}, {pipeline_mode = #tpu.pipeline_mode<synchronous>, transform_indices = @transform_5, window_bounds = array<i64: 64, 64>}, {pipeline_mode = #tpu.pipeline_mode<synchronous>, transform_indices = @transform_6, window_bounds = array<i64: 1, 64>}, {pipeline_mode = #tpu.pipeline_mode<synchronous>, transform_indices = @transform_7, window_bounds = array<i64: 64, 128>}, {pipeline_mode = #tpu.pipeline_mode<synchronous>, transform_indices = @transform_8, window_bounds = array<i64: 1, 128>}, {pipeline_mode = #tpu.pipeline_mode<synchronous>, transform_indices = @transform_9, window_bounds = array<i64: 128, 784>}, {pipeline_mode = #tpu.pipeline_mode<synchronous>, transform_indices = @transform_10, window_bounds = array<i64: 1, 784>}, {transform_indices = @transform_11, window_bounds = array<i64: 16, 784>}]} {
    %c0 = arith.constant 0 : index
    %c0_0 = arith.constant 0 : index
    %0 = vector.load %arg1[%c0, %c0_0] : memref<16x784xf32, #tpu.memory_space<vmem>>, vector<16x784xf32>
    %1 = arith.truncf %0 : vector<16x784xf32> to vector<16x784xbf16>
    %c0_1 = arith.constant 0 : index
    %c0_2 = arith.constant 0 : index
    %2 = vector.load %arg2[%c0_1, %c0_2] : memref<784x128xbf16, #tpu.memory_space<vmem>>, vector<784x128xbf16>
    %cst = arith.constant dense<0.000000e+00> : vector<16x128xf32>
    %3 = tpu.matmul %1, %2, %cst {dimension_numbers = #tpu.dot_dimension_numbers<[1], [0], [0], [1], [0, 0, 1, 1], [], []>} : vector<16x784xbf16>, vector<784x128xbf16>, vector<16x128xf32> -> vector<16x128xf32>
    %c0_3 = arith.constant 0 : index
    %c0_4 = arith.constant 0 : index
    %4 = vector.load %arg3[%c0_3, %c0_4] : memref<1x128xf32, #tpu.memory_space<vmem>>, vector<1x128xf32>
    %5 = vector.broadcast %4 : vector<1x128xf32> to vector<16x128xf32>
    %6 = arith.addf %3, %5 : vector<16x128xf32>
    %cst_5 = arith.constant 0.000000e+00 : f32
    %7 = vector.broadcast %cst_5 : f32 to vector<16x128xf32>
    %8 = arith.maximumf %6, %7 : vector<16x128xf32>
    %9 = arith.truncf %8 : vector<16x128xf32> to vector<16x128xbf16>
    %c0_6 = arith.constant 0 : index
    %c0_7 = arith.constant 0 : index
    %10 = vector.load %arg4[%c0_6, %c0_7] : memref<128x64xbf16, #tpu.memory_space<vmem>>, vector<128x64xbf16>
    %cst_8 = arith.constant dense<0.000000e+00> : vector<16x64xf32>
    %11 = tpu.matmul %9, %10, %cst_8 {dimension_numbers = #tpu.dot_dimension_numbers<[1], [0], [0], [1], [0, 0, 1, 1], [], []>} : vector<16x128xbf16>, vector<128x64xbf16>, vector<16x64xf32> -> vector<16x64xf32>
    %c0_9 = arith.constant 0 : index
    %c0_10 = arith.constant 0 : index
    %12 = vector.load %arg5[%c0_9, %c0_10] : memref<1x64xf32, #tpu.memory_space<vmem>>, vector<1x64xf32>
    %13 = vector.broadcast %12 : vector<1x64xf32> to vector<16x64xf32>
    %14 = arith.addf %11, %13 : vector<16x64xf32>
    %cst_11 = arith.constant 0.000000e+00 : f32
    %15 = vector.broadcast %cst_11 : f32 to vector<16x64xf32>
    %16 = arith.maximumf %14, %15 : vector<16x64xf32>
    %17 = arith.truncf %16 : vector<16x64xf32> to vector<16x64xbf16>
    %c0_12 = arith.constant 0 : index
    %c0_13 = arith.constant 0 : index
    %18 = vector.load %arg6[%c0_12, %c0_13] : memref<64x64xbf16, #tpu.memory_space<vmem>>, vector<64x64xbf16>
    %cst_14 = arith.constant dense<0.000000e+00> : vector<16x64xf32>
    %19 = tpu.matmul %17, %18, %cst_14 {dimension_numbers = #tpu.dot_dimension_numbers<[1], [0], [0], [1], [0, 0, 1, 1], [], []>} : vector<16x64xbf16>, vector<64x64xbf16>, vector<16x64xf32> -> vector<16x64xf32>
    %c0_15 = arith.constant 0 : index
    %c0_16 = arith.constant 0 : index
    %20 = vector.load %arg7[%c0_15, %c0_16] : memref<1x64xf32, #tpu.memory_space<vmem>>, vector<1x64xf32>
    %21 = vector.broadcast %20 : vector<1x64xf32> to vector<16x64xf32>
    %22 = arith.addf %19, %21 : vector<16x64xf32>
    %cst_17 = arith.constant 0.000000e+00 : f32
    %23 = vector.broadcast %cst_17 : f32 to vector<16x64xf32>
    %24 = arith.maximumf %22, %23 : vector<16x64xf32>
    %25 = arith.truncf %24 : vector<16x64xf32> to vector<16x64xbf16>
    %c0_18 = arith.constant 0 : index
    %c0_19 = arith.constant 0 : index
    %26 = vector.load %arg8[%c0_18, %c0_19] : memref<64x128xbf16, #tpu.memory_space<vmem>>, vector<64x128xbf16>
    %cst_20 = arith.constant dense<0.000000e+00> : vector<16x128xf32>
    %27 = tpu.matmul %25, %26, %cst_20 {dimension_numbers = #tpu.dot_dimension_numbers<[1], [0], [0], [1], [0, 0, 1, 1], [], []>} : vector<16x64xbf16>, vector<64x128xbf16>, vector<16x128xf32> -> vector<16x128xf32>
    %c0_21 = arith.constant 0 : index
    %c0_22 = arith.constant 0 : index
    %28 = vector.load %arg9[%c0_21, %c0_22] : memref<1x128xf32, #tpu.memory_space<vmem>>, vector<1x128xf32>
    %29 = vector.broadcast %28 : vector<1x128xf32> to vector<16x128xf32>
    %30 = arith.addf %27, %29 : vector<16x128xf32>
    %cst_23 = arith.constant 0.000000e+00 : f32
    %31 = vector.broadcast %cst_23 : f32 to vector<16x128xf32>
    %32 = arith.maximumf %30, %31 : vector<16x128xf32>
    %33 = arith.truncf %32 : vector<16x128xf32> to vector<16x128xbf16>
    %c0_24 = arith.constant 0 : index
    %c0_25 = arith.constant 0 : index
    %34 = vector.load %arg10[%c0_24, %c0_25] : memref<128x784xbf16, #tpu.memory_space<vmem>>, vector<128x784xbf16>
    %cst_26 = arith.constant dense<0.000000e+00> : vector<16x784xf32>
    %35 = tpu.matmul %33, %34, %cst_26 {dimension_numbers = #tpu.dot_dimension_numbers<[1], [0], [0], [1], [0, 0, 1, 1], [], []>} : vector<16x128xbf16>, vector<128x784xbf16>, vector<16x784xf32> -> vector<16x784xf32>
    %c0_27 = arith.constant 0 : index
    %c0_28 = arith.constant 0 : index
    %36 = vector.load %arg11[%c0_27, %c0_28] : memref<1x784xf32, #tpu.memory_space<vmem>>, vector<1x784xf32>
    %37 = vector.broadcast %36 : vector<1x784xf32> to vector<16x784xf32>
    %38 = arith.addf %35, %37 : vector<16x784xf32>
    %39 = math.tanh %38 : vector<16x784xf32>
    %c0_29 = arith.constant 0 : index
    %c0_30 = arith.constant 0 : index
    %40 = vector.load %arg12[%c0_29, %c0_30] : memref<16x784xf32, #tpu.memory_space<vmem>>, vector<16x784xf32>
    tpu.vector_store %arg12[%c0_29, %c0_30], %39 {strides = array<i32>} : memref<16x784xf32, #tpu.memory_space<vmem>>, vector<16x784xf32>,
    return
  }
  func.func @transform_0(%arg0: i32) -> (i32, i32) {
    %c0_i32 = arith.constant 0 : i32
    %c0_i32_0 = arith.constant 0 : i32
    return %arg0, %c0_i32 : i32, i32
  }
  func.func @transform_1(%arg0: i32) -> (i32, i32) {
    %c0_i32 = arith.constant 0 : i32
    %c0_i32_0 = arith.constant 0 : i32
    %c0_i32_1 = arith.constant 0 : i32
    return %c0_i32, %c0_i32_0 : i32, i32
  }
  func.func @transform_2(%arg0: i32) -> (i32, i32) {
    %c0_i32 = arith.constant 0 : i32
    %c0_i32_0 = arith.constant 0 : i32
    %c0_i32_1 = arith.constant 0 : i32
    return %c0_i32, %c0_i32_0 : i32, i32
  }
  func.func @transform_3(%arg0: i32) -> (i32, i32) {
    %c0_i32 = arith.constant 0 : i32
    %c0_i32_0 = arith.constant 0 : i32
    %c0_i32_1 = arith.constant 0 : i32
    return %c0_i32, %c0_i32_0 : i32, i32
  }
  func.func @transform_4(%arg0: i32) -> (i32, i32) {
    %c0_i32 = arith.constant 0 : i32
    %c0_i32_0 = arith.constant 0 : i32
    %c0_i32_1 = arith.constant 0 : i32
    return %c0_i32, %c0_i32_0 : i32, i32
  }
  func.func @transform_5(%arg0: i32) -> (i32, i32) {
    %c0_i32 = arith.constant 0 : i32
    %c0_i32_0 = arith.constant 0 : i32
    %c0_i32_1 = arith.constant 0 : i32
    return %c0_i32, %c0_i32_0 : i32, i32
  }
  func.func @transform_6(%arg0: i32) -> (i32, i32) {
    %c0_i32 = arith.constant 0 : i32
    %c0_i32_0 = arith.constant 0 : i32
    %c0_i32_1 = arith.constant 0 : i32
    return %c0_i32, %c0_i32_0 : i32, i32
  }
  func.func @transform_7(%arg0: i32) -> (i32, i32) {
    %c0_i32 = arith.constant 0 : i32
    %c0_i32_0 = arith.constant 0 : i32
    %c0_i32_1 = arith.constant 0 : i32
    return %c0_i32, %c0_i32_0 : i32, i32
  }
  func.func @transform_8(%arg0: i32) -> (i32, i32) {
    %c0_i32 = arith.constant 0 : i32
    %c0_i32_0 = arith.constant 0 : i32
    %c0_i32_1 = arith.constant 0 : i32
    return %c0_i32, %c0_i32_0 : i32, i32
  }
  func.func @transform_9(%arg0: i32) -> (i32, i32) {
    %c0_i32 = arith.constant 0 : i32
    %c0_i32_0 = arith.constant 0 : i32
    %c0_i32_1 = arith.constant 0 : i32
    return %c0_i32, %c0_i32_0 : i32, i32
  }
  func.func @transform_10(%arg0: i32) -> (i32, i32) {
    %c0_i32 = arith.constant 0 : i32
    %c0_i32_0 = arith.constant 0 : i32
    %c0_i32_1 = arith.constant 0 : i32
    return %c0_i32, %c0_i32_0 : i32, i32
  }
  func.func @transform_11(%arg0: i32) -> (i32, i32) {
    %c0_i32 = arith.constant 0 : i32
    %c0_i32_0 = arith.constant 0 : i32
    return %arg0, %c0_i32 : i32, i32
  }
}

</mosaic_0001>

<bundles_post_ra>
// kernel: autoencoder_lin_forward.1
= control target key start
LH: loop header
LB: loop body
LE: loop exit
PB: predicated region body
PF: predicated region fallthrough
CT: control target
= control target key end

     0   :  { %v1979_v43 = vmov 0.0   ;;  %vm1980_vm0 = vmmov 0   ;;  %vm459_vm1 = vcmask 130048   ;;  %vm784_vm2 = vcmask 523264   ;;  %s2544_s1 = inlined_call_operand.vmem [shape: bf16[784,128], index: 1, kind: input, shape index: {}]   ;;  %s2545_s0 = inlined_call_operand.vmem [shape: f32[16,784], index: 0, kind: input, shape index: {}]   ;;  %s2546_s3 = inlined_call_operand.vmem [shape: bf16[128,64], index: 3, kind: input, shape index: {}]   ;;  %s2547_s5 = inlined_call_operand.vmem [shape: bf16[64,64], index: 5, kind: input, shape index: {}]   ;;  %s2548_s2 = inlined_call_operand.vmem [shape: f32[1,128], index: 2, kind: input, shape index: {}]   ;;  %s2549_s7 = inlined_call_operand.vmem [shape: bf16[64,128], index: 7, kind: input, shape index: {}]   ;;  %s2550_s4 = inlined_call_operand.vmem [shape: f32[1,64], index: 4, kind: input, shape index: {}]   ;;  %s2551_s9 = inlined_call_operand.vmem [shape: bf16[128,784], index: 9, kind: input, shape index: {}]   ;;  %s2552_s6 = inlined_call_operand.vmem [shape: f32[1,64], index: 6, kind: input, shape index: {}]   ;;  %s2553_s8 = inlined_call_operand.vmem [shape: f32[1,128], index: 8, kind: input, shape index: {}]   ;;  %s2554_s10 = inlined_call_operand.vmem [shape: f32[1,784], index: 10, kind: input, shape index: {}]   ;;  %s2555_s11 = inlined_call_operand.vmem [shape: f32[16,784], index: 11, kind: output, shape index: {}]  }
   0x1   :  { %v1806_v0 = vld [vmem:[%s2544_s1 + $0x78] sm:$0xff]   ;;  %v1810_v4 = vld [vmem:[%s2544_s1 + $0x70] sm:$0xff]   ;;  %v1814_v8 = vld [vmem:[%s2544_s1 + $0x68] sm:$0xff]  }
   0x2   :  { %v1807_v1 = vld [vmem:[%s2544_s1 + $0x38] sm:$0xff]   ;;  %1637 = vmatprep.subr.bf16.mxu0 %v1806_v0  ;;  %v1811_v5 = vld [vmem:[%s2544_s1 + $0x30] sm:$0xff]   ;;  %v1815_v9 = vld [vmem:[%s2544_s1 + $0x28] sm:$0xff]  }
   0x3   :  { %v1808_v2 = vld [vmem:[%s2544_s1 + $0xf8] sm:$0xff]   ;;  %1638 = vmatpush3.bf16.msra.mxu0 %v1807_v1  ;;  %v1812_v6 = vld [vmem:[%s2544_s1 + $0xf0] sm:$0xff]   ;;  %v1816_v10 = vld [vmem:[%s2544_s1 + $0xe8] sm:$0xff]  }
   0x4   :  { %v1809_v3 = vld [vmem:[%s2544_s1 + $0xb8] sm:$0xff]   ;;  %1659 = vmatprep.subr.bf16.mxu1 %v1808_v2  ;;  %1639 = vmatprep.subr.bf16.mxu0 %v1810_v4  ;;  %v1813_v7 = vld [vmem:[%s2544_s1 + $0xb0] sm:$0xff]   ;;  %v1817_v11 = vld [vmem:[%s2544_s1 + $0xa8] sm:$0xff]  }
   0x5   :  { %1660 = vmatpush3.bf16.msra.mxu1 %v1809_v3  ;;  %v1818_v12 = vld [vmem:[%s2544_s1 + $0x60] sm:$0xff]   ;;  %v1822_v16 = vld [vmem:[%s2544_s1 + $0x58] sm:$0xff]   ;;  %v1826_v20 = vld [vmem:[%s2544_s1 + $0x50] sm:$0xff]  }
   0x6   :  { %1661 = vmatprep.subr.bf16.mxu1 %v1812_v6  ;;  %v1819_v13 = vld [vmem:[%s2544_s1 + $0x20] sm:$0xff]   ;;  %v1823_v17 = vld [vmem:[%s2544_s1 + $0x18] sm:$0xff]   ;;  %v1827_v21 = vld [vmem:[%s2544_s1 + $0x10] sm:$0xff]  }
   0x7   :  { %1640 = vmatpush3.bf16.msra.mxu0 %v1811_v5  ;;  %v1820_v14 = vld [vmem:[%s2544_s1 + $0xe0] sm:$0xff]   ;;  %v1824_v18 = vld [vmem:[%s2544_s1 + $0xd8] sm:$0xff]   ;;  %v1828_v22 = vld [vmem:[%s2544_s1 + $0xd0] sm:$0xff]  }
   0x8   :  { %1641 = vmatprep.subr.bf16.mxu0 %v1814_v8  ;;  %v1821_v15 = vld [vmem:[%s2544_s1 + $0xa0] sm:$0xff]   ;;  %v1825_v19 = vld [vmem:[%s2544_s1 + $0x98] sm:$0xff]   ;;  %v1829_v23 = vld [vmem:[%s2544_s1 + $0x90] sm:$0xff]  }
   0x9   :  { %1662 = vmatpush3.bf16.msra.mxu1 %v1813_v7  ;;  %v1830_v24 = vld [vmem:[%s2544_s1 + $0x48] sm:$0xff]   ;;  %v1834_v28 = vld [vmem:[%s2544_s1 + $0x40] sm:$0xff]   ;;  %v46_v36 = vld [vmem:[%s2545_s0 + $0x38] sm:$0xff] }
   0xa   :  { %1663 = vmatprep.subr.bf16.mxu1 %v1816_v10  ;;  %v1831_v25 = vld [vmem:[%s2544_s1 + $0x8] sm:$0xff]   ;;  %v1835_v29 = vld [vmem:[%s2544_s1] sm:$0xff]   ;;  %v1838_v38 = vld [vmem:[%s2544_s1 + $0x178] sm:$0xff]  }
   0xb   :  { %1642 = vmatpush3.bf16.msra.mxu0 %v1815_v9  ;;  %v1832_v26 = vld [vmem:[%s2544_s1 + $0xc8] sm:$0xff]   ;;  %v1836_v30 = vld [vmem:[%s2544_s1 + $0xc0] sm:$0xff]   ;;  %v42_v39 = vld [vmem:[%s2545_s0 + $0x18] sm:$0xff] }
   0xc   :  { %1643 = vmatprep.subr.bf16.mxu0 %v1818_v12  ;;  %v1833_v27 = vld [vmem:[%s2544_s1 + $0x88] sm:$0xff]   ;;  %v47_v32 = vld [vmem:[%s2545_s0 + $0x40] sm:$0xff]  ;;  %v49_v40 = vld [vmem:[%s2545_s0 + $0x50] sm:$0xff] }
   0xd   :  { %1664 = vmatpush3.bf16.msra.mxu1 %v1817_v11  ;;  %v40_v31 = vld [vmem:[%s2545_s0 + $0x8] sm:$0xff]  ;;  %v1837_v34 = vld [vmem:[%s2544_s1 + $0x80] sm:$0xff]   ;;  %v56_v41 = vpack.c.bf16 %v49_v40, %v42_v39  ;;  %v1839_v42 = vld [vmem:[%s2544_s1 + $0x138] sm:$0xff]  }
   0xe   :  { %1665 = vmatprep.subr.bf16.mxu1 %v1820_v14  ;;  %v54_v33 = vpack.c.bf16 %v47_v32, %v40_v31  ;;  %v39_v35 = vld [vmem:[%s2545_s0] sm:$0xff]  ;;  %v41_v44 = vld [vmem:[%s2545_s0 + $0x10] sm:$0xff]  ;;  %v48_v45 = vld [vmem:[%s2545_s0 + $0x48] sm:$0xff] }
   0xf   :  { %1644 = vmatpush3.bf16.msra.mxu0 %v1819_v13  ;;  %v53_v37 = vpack.c.bf16 %v46_v36, %v39_v35  ;;  %536 = vmatprep.mubr.bf16.mxu1 %v56_v41  ;;  %v55_v46 = vpack.c.bf16 %v48_v45, %v41_v44  ;;  %v1840_v47 = vld [vmem:[%s2544_s1 + $0x170] sm:$0xff]   ;;  %v1842_v49 = vld [vmem:[%s2544_s1 + $0x168] sm:$0xff]   ;;  %v1844_v51 = vld [vmem:[%s2544_s1 + $0x160] sm:$0xff]  }
  0x10   :  { %1645 = vmatprep.subr.bf16.mxu0 %v1822_v16  ;;  %495 = vmatprep.mubr.bf16.mxu0 %v54_v33  ;;  %v1841_v48 = vld [vmem:[%s2544_s1 + $0x130] sm:$0xff]   ;;  %v1843_v50 = vld [vmem:[%s2544_s1 + $0x128] sm:$0xff]   ;;  %v1845_v52 = vld [vmem:[%s2544_s1 + $0x120] sm:$0xff]  }
  0x11   :  { %1666 = vmatpush3.bf16.msra.mxu1 %v1821_v15  ;;  %v1846_v53 = vld [vmem:[%s2544_s1 + $0x158] sm:$0xff]   ;;  %v1848_v55 = vld [vmem:[%s2544_s1 + $0x150] sm:$0xff]   ;;  %v1854_v56 = vld [vmem:[%s2544_s1 + $0x180] sm:$0xff]  }
  0x12   :  { %1667 = vmatprep.subr.bf16.mxu1 %v1824_v18  ;;  %v1847_v54 = vld [vmem:[%s2544_s1 + $0x118] sm:$0xff]   ;;  %v44_v57 = vld [vmem:[%s2545_s0 + $0x28] sm:$0xff]  ;;  %v51_v58 = vld [vmem:[%s2545_s0 + $0x60] sm:$0xff] }
  0x13   :  { %1646 = vmatpush3.bf16.msra.mxu0 %v1823_v17  ;;  %v1849_v59 = vld [vmem:[%s2544_s1 + $0x110] sm:$0xff]   ;;  %v58_v60 = vpack.c.bf16 %v51_v58, %v44_v57  ;;  %v52_v62 = vld [vmem:[%s2545_s0 + $0x68] sm:$0xff]  ;;  %v1852_v2 = vld [vmem:[%s2544_s1 + $0x140] sm:$0xff]  }
  0x14   :  { %1647 = vmatprep.subr.bf16.mxu0 %v1826_v20  ;;  %v45_v61 = vld [vmem:[%s2545_s0 + $0x30] sm:$0xff]  ;;  %v1850_v63 = vld [vmem:[%s2544_s1 + $0x148] sm:$0xff]   ;;  %v1853_v3 = vld [vmem:[%s2544_s1 + $0x100] sm:$0xff]  }
  0x15   :  { %1668 = vmatpush3.bf16.msra.mxu1 %v1825_v19  ;;  %v59_v0 = vpack.c.bf16 %v52_v62, %v45_v61  ;;  %v1851_v1 = vld [vmem:[%s2544_s1 + $0x108] sm:$0xff]   ;;  %v43_v4 = vld [vmem:[%s2545_s0 + $0x20] sm:$0xff]  ;;  %v50_v5 = vld [vmem:[%s2545_s0 + $0x58] sm:$0xff] }
  0x16   :  { %1669 = vmatprep.subr.bf16.mxu1 %v1828_v22  ;;  %v57_v6 = vpack.c.bf16 %v50_v5, %v43_v4  ;;  %v1855_v7 = vld [vmem:[%s2546_s3 + $0x38] sm:$0xff]   ;;  %v1856_v8 = vld [vmem:[%s2546_s3 + $0x30] sm:$0xff]   ;;  %v1857_v9 = vld [vmem:[%s2546_s3 + $0x28] sm:$0xff]  }
  0x17   :  { %1648 = vmatpush3.bf16.msra.mxu0 %v1827_v21  ;;  %v1858_v10 = vld [vmem:[%s2546_s3 + $0x20] sm:$0xff]   ;;  %v1859_v11 = vld [vmem:[%s2546_s3 + $0x18] sm:$0xff]   ;;  %v1860_v12 = vld [vmem:[%s2546_s3 + $0x10] sm:$0xff]  }
  0x18   :  { %1649 = vmatprep.subr.bf16.mxu0 %v1830_v24  ;;  %v1861_v13 = vld [vmem:[%s2546_s3 + $0x8] sm:$0xff]   ;;  %v1862_v14 = vld [vmem:[%s2546_s3] sm:$0xff]   ;;  %v1863_v15 = vld [vmem:[%s2547_s5 + $0x18] sm:$0xff]  }
  0x19   :  { %1670 = vmatpush3.bf16.msra.mxu1 %v1829_v23  ;;  %v1871_v4 = vld [vmem:[%s2551_s9 + $0x188] ss:$28 sps:$4 sm:$0xff]  }
  0x1a   :  { %1671 = vmatprep.subr.bf16.mxu1 %v1832_v26  ;;  %v1873_v5 = vld [vmem:[%s2551_s9 + $0x18c] ss:$28 sps:$4 sm:$0xff]  }
  0x1b   :  { %1650 = vmatpush3.bf16.msra.mxu0 %v1831_v25 }
  0x1c   :  { %1651 = vmatprep.subr.bf16.mxu0 %v1834_v28  ;;  %v1509_v28 = vld [vmem:[%s2548_s2] ss:$0 sm:$0xff] }
  0x1d   :  { %1672 = vmatpush3.bf16.msra.mxu1 %v1833_v27 }
  0x1e   :  { %1673 = vmatprep.subr.bf16.mxu1 %v1836_v30 }
  0x1f   :  { %1652 = vmatpush3.bf16.msra.mxu0 %v1835_v29 }
  0x20   :  { %1681 = vmatprep.subr.bf16.mxu0 %v1838_v38 }
  0x21   :  { %1674 = vmatpush3.bf16.msra.mxu1 %v1837_v34 }
  0x22   :  { %1733 = vmatprep.subr.bf16.mxu1 %v1979_v43  ;;  %496 = vmatmul.mubr.bf16.vlgmr.msra.gmra.mxu0 %v53_v37 }
  0x23   :  { %1682 = vmatpush3.bf16.msra.mxu0 %v1839_v42  ;;  %577 = vmatprep.mubr.bf16.mxu0 %v58_v60 }
  0x24   :  { %537 = vmatmul.mubr.bf16.vlgmr.msra.gmra.mxu1 %v55_v46  ;;  %1683 = vmatprep.subr.bf16.mxu0 %v1840_v47 }
  0x25   :  { %1735 = vmatprep.mubr.msk.bf16.mxu1 %vm1980_vm0, %v1979_v43  ;;  %1734 = vmatpush3.bf16.msra.mxu1 %v1854_v56 }
  0x26   :  { %1739 = vmatprep.subr.bf16.mxu1 %v1979_v43 }
  0x27   :  { %1684 = vmatpush3.bf16.msra.mxu0 %v1841_v48 }
  0x28   :  { %1685 = vmatprep.subr.bf16.mxu0 %v1842_v49 }
  0x2b   :  { %1686 = vmatpush3.bf16.msra.mxu0 %v1843_v50 }
  0x2c   :  { %1687 = vmatprep.subr.bf16.mxu0 %v1844_v51  ;;  %1736 = vmatmul.mubr.msk.bf16.vlgmr.msra.gmra.mxu1 %vm459_vm1, %v59_v0  ;;  %v1864_v51 = vld [vmem:[%s2547_s5 + $0x10] sm:$0xff]  }
  0x2d   :  { %1755 = vmatprep.mubr.msk.bf16.mxu1 %vm1980_vm0, %v1979_v43  ;;  %1740 = vmatpush3.bf16.msra.mxu1 %v1855_v7  ;;  %v1879_v7 = vld [vmem:[%s2551_s9 + $0x154] ss:$28 sps:$4 sm:$0xff]  }
  0x2e   :  { %1741 = vmatprep.subr.bf16.mxu1 %v1979_v43 }
  0x2f   :  { %1688 = vmatpush3.bf16.msra.mxu0 %v1845_v52  ;;  %v1865_v52 = vld [vmem:[%s2547_s5 + $0x8] sm:$0xff]  }
  0x30   :  { %1689 = vmatprep.subr.bf16.mxu0 %v1846_v53  ;;  %v1866_v53 = vld [vmem:[%s2547_s5] sm:$0xff]  }
  0x31   :  { %1742 = vmatpush3.bf16.msra.mxu1 %v1856_v8  ;;  %v1877_v8 = vld [vmem:[%s2551_s9 + $0x150] ss:$28 sps:$4 sm:$0xff]  }
  0x32   :  { %1743 = vmatprep.subr.bf16.mxu1 %v1979_v43 }
  0x33   :  { %1690 = vmatpush3.bf16.msra.mxu0 %v1847_v54  ;;  %v1867_v54 = vld [vmem:[%s2549_s7 + $0x18] sm:$0xff]  }
  0x34   :  { %1691 = vmatprep.subr.bf16.mxu0 %v1848_v55  ;;  %v1560_v55 = vld [vmem:[%s2550_s4] ss:$0 sm:$0xff] }
  0x35   :  { %1744 = vmatpush3.bf16.msra.mxu1 %v1857_v9  ;;  %v1885_v9 = vld [vmem:[%s2551_s9 + $0x11c] ss:$28 sps:$4 sm:$0xff]  }
  0x36   :  { %1745 = vmatprep.subr.bf16.mxu1 %v1979_v43 }
  0x37   :  { %1692 = vmatpush3.bf16.msra.mxu0 %v1849_v59 }
  0x38   :  { %1693 = vmatprep.subr.bf16.mxu0 %v1850_v63 }
  0x39   :  { %1746 = vmatpush3.bf16.msra.mxu1 %v1858_v10  ;;  %v1883_v10 = vld [vmem:[%s2551_s9 + $0x118] ss:$28 sps:$4 sm:$0xff]  }
  0x3a   :  { %1747 = vmatprep.subr.bf16.mxu1 %v1979_v43 }
  0x3b   :  { %1694 = vmatpush3.bf16.msra.mxu0 %v1851_v1  ;;  %v1868_v1 = vld [vmem:[%s2549_s7 + $0x10] sm:$0xff]  }
  0x3c   :  { %1695 = vmatprep.subr.bf16.mxu0 %v1852_v2  ;;  %v1869_v2 = vld [vmem:[%s2549_s7 + $0x8] sm:$0xff]  }
  0x3d   :  { %1748 = vmatpush3.bf16.msra.mxu1 %v1859_v11  ;;  %v1891_v11 = vld [vmem:[%s2551_s9 + $0xe4] ss:$28 sps:$4 sm:$0xff]  }
  0x3e   :  { %1749 = vmatprep.subr.bf16.mxu1 %v1979_v43 }
  0x3f   :  { %1696 = vmatpush3.bf16.msra.mxu0 %v1853_v3  ;;  %v1870_v3 = vld [vmem:[%s2549_s7] sm:$0xff]  }
  0x40   :  { %1759 = vmatprep.subr.bf16.mxu0 %v1979_v43 }
  0x41   :  { %1750 = vmatpush3.bf16.msra.mxu1 %v1860_v12  ;;  %v1889_v12 = vld [vmem:[%s2551_s9 + $0xe0] ss:$28 sps:$4 sm:$0xff]  }
  0x42   :  { %578 = vmatmul.mubr.bf16.vlgmr.msra.gmra.mxu0 %v57_v6  ;;  %1751 = vmatprep.subr.bf16.mxu1 %v1979_v43  ;;  %v1876_v6 = vld [vmem:[%s2551_s9 + $0x194] ss:$28 sps:$4 sm:$0xff]  }
  0x43   :  { %1767 = vmatprep.mubr.msk.bf16.mxu0 %vm1980_vm0, %v1979_v43  ;;  %1760 = vmatpush3.bf16.msra.mxu0 %v1863_v15  ;;  %v1903_v15 = vld [vmem:[%s2551_s9 + $0x74] ss:$28 sps:$4 sm:$0xff]  }
  0x44   :  { %1761 = vmatprep.subr.bf16.mxu0 %v1979_v43 }
  0x45   :  { %1752 = vmatpush3.bf16.msra.mxu1 %v1861_v13  ;;  %v1897_v13 = vld [vmem:[%s2551_s9 + $0xac] ss:$28 sps:$4 sm:$0xff]  }
  0x46   :  { %1753 = vmatprep.subr.bf16.mxu1 %v1979_v43 }
  0x47   :  { %1762 = vmatpush3.bf16.msra.mxu0 %v1864_v51 }
  0x48   :  { %1763 = vmatprep.subr.bf16.mxu0 %v1979_v43 }
  0x49   :  { %1754 = vmatpush3.bf16.msra.mxu1 %v1862_v14  ;;  %v1895_v14 = vld [vmem:[%s2551_s9 + $0xa8] ss:$28 sps:$4 sm:$0xff]  }
  0x4a   :  { %1771 = vmatprep.subr.bf16.mxu1 %v1979_v43 }
  0x4b   :  { %1764 = vmatpush3.bf16.msra.mxu0 %v1865_v52 }
  0x4c   :  { %1765 = vmatprep.subr.bf16.mxu0 %v1979_v43 }
  0x4f   :  { %1766 = vmatpush3.bf16.msra.mxu0 %v1866_v53 }
  0x50   :  { %1307 = vmatprep.subr.bf16.mxu0 %v1873_v5  ;;  %v1934_v5 = vld [vmem:[%s2551_s9 + $0xf8] ss:$28 sps:$4 sm:$0xff]  }
  0xe2   :  { %v1653_v19 = vpop.f32.mrf.mxu0 }
  0xe4   :  { %v1675_v16 = vpop.f32.mrf.mxu1  ;;  %v1654_v21 = vpop.f32.mrf.mxu0 }
  0xe5   :  { %v1655_v27 = vadd.f32 %v1654_v21, %v1653_v19 }
  0xe6   :  { %v1676_v17 = vpop.f32.mrf.mxu1  ;;  %v1656_v24 = vpop.f32.mrf.mxu0 }
  0xe7   :  { %v498_v30 = vadd.f32 %v1655_v27, %v1509_v28  ;;  %v1677_v31 = vadd.f32 %v1676_v17, %v1675_v16  ;;  %v1901_v16 = vld [vmem:[%s2551_s9 + $0x70] ss:$28 sps:$4 sm:$0xff]   ;;  %v1569_v17 = vld [vmem:[%s2552_s6] ss:$0 sm:$0xff] }
  0xe8   :  { %v1678_v18 = vpop.f32.mrf.mxu1  ;;  %v1657_v29 = vpop.f32.mrf.mxu0 }
  0xe9   :  { %v1658_v32 = vadd.f32 %v1657_v29, %v1656_v24  ;;  %v539_v35 = vadd.f32 %v1677_v31, %v498_v30  ;;  %v1880_v29 = vld [vmem:[%s2551_s9 + $0x158] ss:$28 sps:$4 sm:$0xff]   ;;  %v1888_v30 = vld [vmem:[%s2551_s9 + $0x124] ss:$28 sps:$4 sm:$0xff]  }
  0xea   :  { %v1679_v20 = vpop.f32.mrf.mxu1  ;;  %v1886_v31 = vld [vmem:[%s2551_s9 + $0x120] ss:$28 sps:$4 sm:$0xff]  }
  0xeb   :  { %v501_v36 = vadd.f32 %v1658_v32, %v1509_v28  ;;  %v1680_v37 = vadd.f32 %v1679_v20, %v1678_v18  ;;  %v1882_v28 = vld [vmem:[%s2551_s9 + $0x15c] ss:$28 sps:$4 sm:$0xff]   ;;  %v1894_v32 = vld [vmem:[%s2551_s9 + $0xec] ss:$28 sps:$4 sm:$0xff]  }
  0xec   :  { %v620_v22 = vpop.f32.mrf.mxu1 }
  0xed   :  { %v542_v42 = vadd.f32 %v1680_v37, %v501_v36  ;;  %v1906_v36 = vld [vmem:[%s2551_s9 + $0x7c] ss:$28 sps:$4 sm:$0xff]  }
  0xee   :  { %v1737_v23 = vpop.f32.mrf.mxu1  ;;  %v1904_v37 = vld [vmem:[%s2551_s9 + $0x78] ss:$28 sps:$4 sm:$0xff]  }
  0xf0   :  { %v623_v25 = vpop.f32.mrf.mxu1 }
  0xf2   :  { %v1738_v26 = vpop.f32.mrf.mxu1 }
  0xf3   :  { %v1874_v26 = vld [vmem:[%s2551_s9 + $0x190] ss:$28 sps:$4 sm:$0xff]  }
 0x102   :  { %v1697_v33 = vpop.f32.mrf.mxu0 }
 0x104   :  { %v1698_v34 = vpop.f32.mrf.mxu0 }
 0x105   :  { %v1699_v38 = vadd.f32 %v1698_v34, %v1697_v33  ;;  %v1892_v33 = vld [vmem:[%s2551_s9 + $0xe8] ss:$28 sps:$4 sm:$0xff]   ;;  %v1900_v34 = vld [vmem:[%s2551_s9 + $0xb4] ss:$28 sps:$4 sm:$0xff]  }
 0x106   :  { %v1700_v39 = vpop.f32.mrf.mxu0 }
 0x107   :  { %v580_v40 = vadd.f32 %v1699_v38, %v539_v35  ;;  %v1898_v35 = vld [vmem:[%s2551_s9 + $0xb0] ss:$28 sps:$4 sm:$0xff]   ;;  %v1909_v38 = vld [vmem:[%s2551_s9 + $0x3c] ss:$28 sps:$4 sm:$0xff]  }
 0x108   :  { %v1701_v41 = vpop.f32.mrf.mxu0 }
 0x109   :  { %v1702_v44 = vadd.f32 %v1701_v41, %v1700_v39  ;;  %v621_v45 = vadd.f32 %v620_v22, %v580_v40  ;;  %v1912_v39 = vld [vmem:[%s2551_s9 + $0x44] ss:$28 sps:$4 sm:$0xff]   ;;  %v1907_v40 = vld [vmem:[%s2551_s9 + $0x38] ss:$28 sps:$4 sm:$0xff]  }
 0x10a   :  { %v1910_v41 = vld [vmem:[%s2551_s9 + $0x40] ss:$28 sps:$4 sm:$0xff]  }
 0x10b   :  { %v583_v46 = vadd.f32 %v1702_v44, %v542_v42  ;;  %v627_v48 = vmax.f32 %v621_v45, 0.0  ;;  %v1915_v42 = vld [vmem:[%s2551_s9 + $0x4] ss:$28 sps:$4 sm:$0xff]   ;;  %v1918_v44 = vld [vmem:[%s2551_s9 + $0xc] ss:$28 sps:$4 sm:$0xff]  }
 0x10c   :  { %v1913_v45 = vld [vmem:[%s2551_s9] ss:$28 sps:$4 sm:$0xff]  }
 0x10d   :  { %v624_v47 = vadd.f32 %v623_v25, %v583_v46  ;;  %v1916_v46 = vld [vmem:[%s2551_s9 + $0x8] ss:$28 sps:$4 sm:$0xff]  }
 0x10f   :  { %v628_v49 = vmax.f32 %v624_v47, 0.0  ;;  %v1921_v47 = vld [vmem:[%s2551_s9 + $0x19c] ss:$28 sps:$4 sm:$0xff]  }
 0x111   :  { %v629_v50 = vpack.c.bf16 %v628_v49, %v627_v48  ;;  %v1981_v48 = vmov 0   ;;  %v1575_v49 = vld [vmem:[%s2553_s8] ss:$0 sm:$0xff] }
 0x113   :  { %1756 = vmatmul.mubr.bf16.vlgmr.msra.gmra.mxu1 %v629_v50 }
 0x114   :  { %1779 = vmatprep.mubr.msk.bf16.mxu1 %vm1980_vm0, %v1979_v43  ;;  %1772 = vmatpush3.bf16.msra.mxu1 %v1867_v54 }
 0x115   :  { %1773 = vmatprep.subr.bf16.mxu1 %v1979_v43 }
 0x118   :  { %1774 = vmatpush3.bf16.msra.mxu1 %v1868_v1  ;;  %v1927_v1 = vld [vmem:[%s2551_s9 + $0x128] ss:$28 sps:$4 sm:$0xff]  }
 0x119   :  { %1775 = vmatprep.subr.bf16.mxu1 %v1979_v43 }
 0x11c   :  { %1776 = vmatpush3.bf16.msra.mxu1 %v1869_v2  ;;  %v1930_v2 = vld [vmem:[%s2551_s9 + $0x130] ss:$28 sps:$4 sm:$0xff]  }
 0x11d   :  { %1777 = vmatprep.subr.bf16.mxu1 %v1979_v43 }
 0x120   :  { %1778 = vmatpush3.bf16.msra.mxu1 %v1870_v3  ;;  %v1933_v3 = vld [vmem:[%s2551_s9 + $0xf4] ss:$28 sps:$4 sm:$0xff]  }
 0x121   :  { %1350 = vmatprep.subr.bf16.mxu1 %v1876_v6  ;;  %v1937_v6 = vld [vmem:[%s2551_s9 + $0xbc] ss:$28 sps:$4 sm:$0xff]  }
 0x1d3   :  { %v735_v56 = vpop.f32.mrf.mxu1 }
 0x1d4   :  { %v736_v58 = vadd.f32 %v1560_v55, %v735_v56 }
 0x1d5   :  { %v1757_v57 = vpop.f32.mrf.mxu1 }
 0x1d6   :  { %v742_v62 = vmax.f32 %v736_v58, 0.0  ;;  %v1919_v58 = vld [vmem:[%s2551_s9 + $0x198] ss:$28 sps:$4 sm:$0xff]  }
 0x1d7   :  { %v738_v59 = vpop.f32.mrf.mxu1 }
 0x1d8   :  { %v739_v60 = vadd.f32 %v1560_v55, %v738_v59  ;;  %v1922_v59 = vld [vmem:[%s2551_s9 + $0x1a0] ss:$28 sps:$4 sm:$0xff]  }
 0x1d9   :  { %v1758_v61 = vpop.f32.mrf.mxu1 }
 0x1da   :  { %v743_v63 = vmax.f32 %v739_v60, 0.0  ;;  %v1925_v61 = vld [vmem:[%s2551_s9 + $0x164] ss:$28 sps:$4 sm:$0xff]  }
 0x1dc   :  { %v744_v0 = vpack.c.bf16 %v743_v63, %v742_v62  ;;  %v1923_v62 = vld [vmem:[%s2551_s9 + $0x160] ss:$28 sps:$4 sm:$0xff]   ;;  %v1926_v63 = vld [vmem:[%s2551_s9 + $0x168] ss:$28 sps:$4 sm:$0xff]  }
 0x1de   :  { %1768 = vmatmul.mubr.msk.bf16.vlgmr.msra.gmra.mxu0 %vm784_vm2, %v744_v0  ;;  %v1929_v0 = vld [vmem:[%s2551_s9 + $0x12c] ss:$28 sps:$4 sm:$0xff]  }
 0x1df   :  { %1308 = vmatpush1.bf16.msra.mxu0 %v1871_v4  ;;  %1339 = vmatprep.mubr.bf16.mxu0 %v1981_v48  ;;  %v1931_v4 = vld [vmem:[%s2551_s9 + $0xf0] ss:$28 sps:$4 sm:$0xff]  }
 0x1e0   :  { %1309 = vmatprep.subr.bf16.mxu0 %v1879_v7  ;;  %v1935_v7 = vld [vmem:[%s2551_s9 + $0xb8] ss:$28 sps:$4 sm:$0xff]  }
 0x1e3   :  { %1310 = vmatpush1.bf16.msra.mxu0 %v1877_v8  ;;  %v1938_v8 = vld [vmem:[%s2551_s9 + $0xc0] ss:$28 sps:$4 sm:$0xff]  }
 0x1e4   :  { %1311 = vmatprep.subr.bf16.mxu0 %v1885_v9  ;;  %v1941_v9 = vld [vmem:[%s2551_s9 + $0x84] ss:$28 sps:$4 sm:$0xff]  }
 0x1e7   :  { %1312 = vmatpush1.bf16.msra.mxu0 %v1883_v10  ;;  %v1939_v10 = vld [vmem:[%s2551_s9 + $0x80] ss:$28 sps:$4 sm:$0xff]  }
 0x1e8   :  { %1313 = vmatprep.subr.bf16.mxu0 %v1891_v11  ;;  %v1942_v11 = vld [vmem:[%s2551_s9 + $0x88] ss:$28 sps:$4 sm:$0xff]  }
 0x1eb   :  { %1314 = vmatpush1.bf16.msra.mxu0 %v1889_v12  ;;  %v1945_v12 = vld [vmem:[%s2551_s9 + $0x4c] ss:$28 sps:$4 sm:$0xff]  }
 0x1ec   :  { %1315 = vmatprep.subr.bf16.mxu0 %v1897_v13  ;;  %v1943_v13 = vld [vmem:[%s2551_s9 + $0x48] ss:$28 sps:$4 sm:$0xff]  }
 0x1ef   :  { %1316 = vmatpush1.bf16.msra.mxu0 %v1895_v14  ;;  %v1946_v14 = vld [vmem:[%s2551_s9 + $0x50] ss:$28 sps:$4 sm:$0xff]  }
 0x1f0   :  { %1317 = vmatprep.subr.bf16.mxu0 %v1903_v15  ;;  %v1949_v15 = vld [vmem:[%s2551_s9 + $0x14] ss:$28 sps:$4 sm:$0xff]  }
 0x1f3   :  { %1318 = vmatpush1.bf16.msra.mxu0 %v1901_v16  ;;  %v1947_v16 = vld [vmem:[%s2551_s9 + $0x10] ss:$28 sps:$4 sm:$0xff]  }
 0x1f4   :  { %1319 = vmatprep.subr.bf16.mxu0 %v1909_v38 }
 0x1f7   :  { %1320 = vmatpush1.bf16.msra.mxu0 %v1907_v40 }
 0x1f8   :  { %1321 = vmatprep.subr.bf16.mxu0 %v1915_v42 }
 0x1fb   :  { %1322 = vmatpush1.bf16.msra.mxu0 %v1913_v45 }
 0x1fc   :  { %1393 = vmatprep.subr.bf16.mxu0 %v1921_v47 }
 0x29e   :  { %v822_v18 = vpop.f32.mrf.mxu0 }
 0x29f   :  { %v823_v20 = vadd.f32 %v1569_v17, %v822_v18  ;;  %v984_v18 = vlaneseq }
 0x2a0   :  { %v1769_v19 = vpop.f32.mrf.mxu0 }
 0x2a1   :  { %v829_v24 = vmax.f32 %v823_v20, 0.0  ;;  %v985_v19 = vshrl.u32 %v984_v18, 7 }
 0x2a2   :  { %v825_v21 = vpop.f32.mrf.mxu0 }
 0x2a3   :  { %v826_v22 = vadd.f32 %v1569_v17, %v825_v21  ;;  %v1950_v17 = vld [vmem:[%s2551_s9 + $0x18] ss:$28 sps:$4 sm:$0xff]   ;;  %v986_v20 = vsub.s32 0, %v985_v19  ;;  %v994_v21 = vsub.s32 2, %v985_v19 }
 0x2a4   :  { %v1770_v23 = vpop.f32.mrf.mxu0 }
 0x2a5   :  { %v830_v25 = vmax.f32 %v826_v22, 0.0  ;;  %v982_v22 = vld [vmem:[%s2554_s10] sm:$0x7f]  ;;  %v990_v23 = vsub.s32 1, %v985_v19 }
 0x2a7   :  { %v831_v27 = vpack.c.bf16 %v830_v25, %v829_v24  ;;  %v998_v24 = vsub.s32 3, %v985_v19  ;;  %v987_v25 = vrot.slane %v982_v22, %v986_v20 }
 0x2a9   :  { %1780 = vmatmul.mubr.msk.bf16.vlgmr.msra.gmra.mxu1 %vm784_vm2, %v831_v27  ;;  %v991_v27 = vrot.slane %v982_v22, %v990_v23 }
 0x2aa   :  { %1351 = vmatpush1.bf16.msra.mxu1 %v1874_v26  ;;  %1382 = vmatprep.mubr.bf16.mxu1 %v1981_v48  ;;  %v995_v26 = vrot.slane %v982_v22, %v994_v21 }
 0x2ab   :  { %1352 = vmatprep.subr.bf16.mxu1 %v1882_v28  ;;  %v999_v28 = vrot.slane %v982_v22, %v998_v24 }
 0x2ae   :  { %1353 = vmatpush1.bf16.msra.mxu1 %v1880_v29 }
 0x2af   :  { %1354 = vmatprep.subr.bf16.mxu1 %v1888_v30 }
 0x2b2   :  { %1355 = vmatpush1.bf16.msra.mxu1 %v1886_v31 }
 0x2b3   :  { %1356 = vmatprep.subr.bf16.mxu1 %v1894_v32 }
 0x2b6   :  { %1357 = vmatpush1.bf16.msra.mxu1 %v1892_v33 }
 0x2b7   :  { %1358 = vmatprep.subr.bf16.mxu1 %v1900_v34 }
 0x2ba   :  { %1359 = vmatpush1.bf16.msra.mxu1 %v1898_v35 }
 0x2bb   :  { %1360 = vmatprep.subr.bf16.mxu1 %v1906_v36 }
 0x2be   :  { %1361 = vmatpush1.bf16.msra.mxu1 %v1904_v37 }
 0x2bf   :  { %1362 = vmatprep.subr.bf16.mxu1 %v1912_v39 }
 0x2c2   :  { %1363 = vmatpush1.bf16.msra.mxu1 %v1910_v41 }
 0x2c3   :  { %1364 = vmatprep.subr.bf16.mxu1 %v1918_v44 }
 0x2c6   :  { %1365 = vmatpush1.bf16.msra.mxu1 %v1916_v46 }
 0x2c7   :  { %1783 = vmatprep.subr.bf16.mxu1 %v1979_v43 }
 0x369   :  { %v908_v50 = vpop.f32.mrf.mxu1 }
 0x36a   :  { %v909_v52 = vadd.f32 %v1575_v49, %v908_v50 }
 0x36b   :  { %v1781_v51 = vpop.f32.mrf.mxu1 }
 0x36c   :  { %v915_v56 = vmax.f32 %v909_v52, 0.0 }
 0x36d   :  { %v911_v53 = vpop.f32.mrf.mxu1 }
 0x36e   :  { %v912_v54 = vadd.f32 %v1575_v49, %v911_v53  ;;  %v1002_v53 = vsub.s32 4, %v985_v19 }
 0x36f   :  { %v1782_v55 = vpop.f32.mrf.mxu1 }
 0x370   :  { %v916_v57 = vmax.f32 %v912_v54, 0.0  ;;  %v1010_v54 = vsub.s32 6, %v985_v19  ;;  %v1006_v55 = vsub.s32 5, %v985_v19 }
 0x372   :  { %v917_v60 = vpack.c.bf16 %v916_v57, %v915_v56  ;;  %v1003_v56 = vrot.slane %v982_v22, %v1002_v53  ;;  %v1011_v57 = vrot.slane %v982_v22, %v1010_v54 }
 0x374   :  { %1340 = vmatmul.mubr.bf16.vlgmr.msra.gmra.mxu0 %v917_v60  ;;  %1383 = vmatmul.mubr.bf16.vlgmr.msra.gmra.mxu1 %v917_v60 }
 0x375   :  { %1394 = vmatpush1.bf16.msra.mxu0 %v1919_v58  ;;  %1784 = vmatpush3.bf16.msra.mxu1 %v1922_v59  ;;  %v1007_v58 = vrot.slane %v982_v22, %v1006_v55 }
 0x376   :  { %1395 = vmatprep.subr.bf16.mxu0 %v1925_v61  ;;  %1785 = vmatprep.subr.bf16.mxu1 %v1979_v43 }
 0x377   :  { %1425 = vmatprep.mubr.bf16.mxu0 %v1981_v48  ;;  %1799 = vmatprep.mubr.msk.bf16.mxu1 %vm1980_vm0, %v1979_v43 }
 0x379   :  { %1396 = vmatpush1.bf16.msra.mxu0 %v1923_v62  ;;  %1786 = vmatpush3.bf16.msra.mxu1 %v1926_v63 }
 0x37a   :  { %1397 = vmatprep.subr.bf16.mxu0 %v1929_v0  ;;  %1787 = vmatprep.subr.bf16.mxu1 %v1979_v43 }
 0x37d   :  { %1398 = vmatpush1.bf16.msra.mxu0 %v1927_v1  ;;  %1788 = vmatpush3.bf16.msra.mxu1 %v1930_v2 }
 0x37e   :  { %1399 = vmatprep.subr.bf16.mxu0 %v1933_v3  ;;  %1789 = vmatprep.subr.bf16.mxu1 %v1979_v43 }
 0x381   :  { %1400 = vmatpush1.bf16.msra.mxu0 %v1931_v4  ;;  %1790 = vmatpush3.bf16.msra.mxu1 %v1934_v5 }
 0x382   :  { %1401 = vmatprep.subr.bf16.mxu0 %v1937_v6  ;;  %1791 = vmatprep.subr.bf16.mxu1 %v1979_v43 }
 0x385   :  { %1402 = vmatpush1.bf16.msra.mxu0 %v1935_v7  ;;  %1792 = vmatpush3.bf16.msra.mxu1 %v1938_v8 }
 0x386   :  { %1403 = vmatprep.subr.bf16.mxu0 %v1941_v9  ;;  %1793 = vmatprep.subr.bf16.mxu1 %v1979_v43 }
 0x389   :  { %1404 = vmatpush1.bf16.msra.mxu0 %v1939_v10  ;;  %1794 = vmatpush3.bf16.msra.mxu1 %v1942_v11 }
 0x38a   :  { %1405 = vmatprep.subr.bf16.mxu0 %v1945_v12  ;;  %1795 = vmatprep.subr.bf16.mxu1 %v1979_v43 }
 0x38d   :  { %1406 = vmatpush1.bf16.msra.mxu0 %v1943_v13  ;;  %1796 = vmatpush3.bf16.msra.mxu1 %v1946_v14 }
 0x38e   :  { %1407 = vmatprep.subr.bf16.mxu0 %v1949_v15  ;;  %1797 = vmatprep.subr.bf16.mxu1 %v1979_v43 }
 0x391   :  { %1408 = vmatpush1.bf16.msra.mxu0 %v1947_v16  ;;  %1798 = vmatpush3.bf16.msra.mxu1 %v1950_v17 }
 0x394   :  { %1426 = vmatmul.mubr.bf16.vlgmr.msra.gmra.mxu0 %v917_v60  ;;  %1800 = vmatmul.mubr.bf16.vlgmr.msra.gmra.mxu1 %v917_v60 }
 0x434   :  { %v1341_v29 = vpop.f32.mrf.mxu0  ;;  %v1384_v43 = vpop.f32.mrf.mxu1 }
 0x435   :  { %v1342_v30 = vadd.f32 %v1341_v29, %v987_v25  ;;  %v1385_v31 = vadd.f32 %v1384_v43, %v995_v26 }
 0x436   :  { %v1343_v32 = vpop.f32.mrf.mxu0  ;;  %v1386_v33 = vpop.f32.mrf.mxu1 }
 0x437   :  { %1951 = vtanh.f32 %v1342_v30  ;;  %v1344_v34 = vadd.f32 %v1343_v32, %v991_v27  ;;  %v1387_v35 = vadd.f32 %v1386_v33, %v999_v28 }
 0x438   :  { %1953 = vtanh.f32 %v1385_v31  ;;  %v1345_v36 = vpop.f32.mrf.mxu0  ;;  %v1388_v37 = vpop.f32.mrf.mxu1 }
 0x439   :  { %1955 = vtanh.f32 %v1344_v34  ;;  %v1346_v38 = vadd.f32 %v1345_v36, %v987_v25  ;;  %v1389_v39 = vadd.f32 %v1388_v37, %v995_v26 }
 0x43a   :  { %1957 = vtanh.f32 %v1387_v35  ;;  %v1347_v40 = vpop.f32.mrf.mxu0  ;;  %v1390_v41 = vpop.f32.mrf.mxu1 }
 0x43b   :  { %1959 = vtanh.f32 %v1346_v38  ;;  %v1348_v42 = vadd.f32 %v1347_v40, %v991_v27  ;;  %v1391_v44 = vadd.f32 %v1390_v41, %v999_v28 }
 0x43c   :  { %1961 = vtanh.f32 %v1389_v39 }
 0x43d   :  { %1963 = vtanh.f32 %v1348_v42 }
 0x43e   :  { %1965 = vtanh.f32 %v1391_v44 }
 0x444   :  { %v1952_v45 = vpop.eup %1951 }
 0x445   :  { %v1954_v46 = vpop.eup %1953  ;;  %1491 = vst [vmem:[%s2555_s11] sm:$0xff] %v1952_v45 }
 0x446   :  { %v1956_v47 = vpop.eup %1955  ;;  %1493 = vst [vmem:[%s2555_s11 + $0x10] sm:$0xff] %v1954_v46 }
 0x447   :  { %v1958_v48 = vpop.eup %1957  ;;  %1492 = vst [vmem:[%s2555_s11 + $0x8] sm:$0xff] %v1956_v47 }
 0x448   :  { %v1960_v49 = vpop.eup %1959  ;;  %1494 = vst [vmem:[%s2555_s11 + $0x18] sm:$0xff] %v1958_v48 }
 0x449   :  { %v1962_v50 = vpop.eup %1961  ;;  %1498 = vst [vmem:[%s2555_s11 + $0x38] sm:$0xff] %v1960_v49 }
 0x44a   :  { %v1964_v51 = vpop.eup %1963  ;;  %1500 = vst [vmem:[%s2555_s11 + $0x48] sm:$0xff] %v1962_v50 }
 0x44b   :  { %v1966_v52 = vpop.eup %1965  ;;  %1499 = vst [vmem:[%s2555_s11 + $0x40] sm:$0xff] %v1964_v51 }
 0x44c   :  { %1501 = vst [vmem:[%s2555_s11 + $0x50] sm:$0xff] %v1966_v52 }
 0x454   :  { %v1427_v59 = vpop.f32.mrf.mxu0  ;;  %v1470_v60 = vpop.f32.mrf.mxu1 }
 0x455   :  { %v1428_v61 = vadd.f32 %v1427_v59, %v1003_v56  ;;  %v1471_v62 = vadd.f32 %v1470_v60, %v1011_v57 }
 0x456   :  { %v1429_v63 = vpop.f32.mrf.mxu0  ;;  %v1801_v0 = vpop.f32.mrf.mxu1 }
 0x457   :  { %1967 = vtanh.f32 %v1428_v61  ;;  %v1430_v1 = vadd.f32 %v1429_v63, %v1007_v58 }
 0x458   :  { %1969 = vtanh.f32 %v1471_v62  ;;  %v1431_v2 = vpop.f32.mrf.mxu0  ;;  %v1473_v3 = vpop.f32.mrf.mxu1 }
 0x459   :  { %1971 = vtanh.f32 %v1430_v1  ;;  %v1432_v4 = vadd.f32 %v1431_v2, %v1003_v56  ;;  %v1474_v5 = vadd.f32 %v1473_v3, %v1011_v57 }
 0x45a   :  { %v1433_v6 = vpop.f32.mrf.mxu0  ;;  %v1802_v7 = vpop.f32.mrf.mxu1 }
 0x45b   :  { %1973 = vtanh.f32 %v1432_v4  ;;  %v1434_v8 = vadd.f32 %v1433_v6, %v1007_v58 }
 0x45c   :  { %1975 = vtanh.f32 %v1474_v5 }
 0x45d   :  { %1977 = vtanh.f32 %v1434_v8 }
 0x464   :  { %v1968_v9 = vpop.eup %1967 }
 0x465   :  { %v1970_v10 = vpop.eup %1969  ;;  %1495 = vst [vmem:[%s2555_s11 + $0x20] sm:$0xff] %v1968_v9 }
 0x466   :  { %v1972_v11 = vpop.eup %1971  ;;  %1497 = vst.msk [vmem:[%s2555_s11 + $0x30] sm:$0xff] %vm459_vm1, %v1970_v10 }
 0x467   :  { %1496 = vst [vmem:[%s2555_s11 + $0x28] sm:$0xff] %v1972_v11 }
 0x468   :  { %v1974_v12 = vpop.eup %1973 }
 0x469   :  { %v1976_v13 = vpop.eup %1975  ;;  %1502 = vst [vmem:[%s2555_s11 + $0x58] sm:$0xff] %v1974_v12 }
 0x46a   :  { %v1978_v14 = vpop.eup %1977  ;;  %1504 = vst.msk [vmem:[%s2555_s11 + $0x68] sm:$0xff] %vm459_vm1, %v1976_v13 }
 0x46b   :  { %1503 = vst [vmem:[%s2555_s11 + $0x60] sm:$0xff] %v1978_v14 }

</bundles_post_ra>
